<compile_context>
chip_gen: v7x
topology: tpu7x:2x2x1
jax: 0.10.0
libtpu: 0.0.40
codegen_flags: <defaults>
</compile_context>

<pallas_src>
import jax
import jax.numpy as jnp
import numpy as np
from jax.experimental import pallas as pl
from jax.experimental.pallas import tpu as pltpu


# --------------------------------------------------------------------------
# VMEM sizing helpers (generation + padding aware)
# --------------------------------------------------------------------------
def _vmem_capacity_bytes():
    try:
        return int(pltpu.get_tpu_info().vmem_capacity_bytes)
    except Exception:
        return 64 * 1024 * 1024          # conservative fallback (v7x per-TC VMEM)


def _round_up(x, m):
    return -(-x // m) * m


def _padded_tile_bytes(rows, cols, dtype):
    """VMEM footprint of a 2-D tile after (sublane, 128) layout padding."""
    itemsize = jnp.dtype(dtype).itemsize
    sublane = max(8, 32 // itemsize)     # 8 (f32) / 16 (bf16) / 32 (int8)
    return _round_up(rows, sublane) * _round_up(cols, 128) * itemsize


def _fused_step_bytes(bt, C, S, dtype):
    a_b = bt * _padded_tile_bytes(C, S, dtype)
    at_b = bt * _padded_tile_bytes(S, C, dtype)
    o_b = a_b
    # f32 temps: W (C,C), weight_value (C,S), promoted copy of `a` for matmul 2.
    temps = bt * (_padded_tile_bytes(C, C, jnp.float32)
                  + 2 * _padded_tile_bytes(C, S, jnp.float32))
    return 2 * (a_b + at_b + o_b) + temps          # x2: double-buffered pipeline


def _tiled_step_bytes(C, ts, dtype):
    a_b = _padded_tile_bytes(C, ts, dtype)
    at_b = _padded_tile_bytes(ts, C, dtype)
    o_b = a_b
    w_b = _padded_tile_bytes(C, C, jnp.float32)              # persistent scratch
    temps = 2 * _padded_tile_bytes(C, ts, jnp.float32)       # wv + promoted a tile
    return 2 * (a_b + at_b + o_b) + w_b + temps


def _pick_batch_tile(B, C, S, dtype, budget):
    """Largest divisor of B (capped so the grid has >=2 steps) fitting budget."""
    cap = max(1, B // 2) if B >= 2 else 1            # keep both v7x TCs busy
    for bt in range(min(cap, 8), 0, -1):
        if B % bt:
            continue
        if _fused_step_bytes(bt, C, S, dtype) <= budget:
            return bt
    return 0                                          # nothing fits -> tiled path


def _pick_s_tile(S, C, dtype, budget):
    """Largest 128-multiple divisor of S whose tiled working set fits budget."""
    best = 0
    ts = 128
    while ts <= S:
        if S % ts == 0 and _tiled_step_bytes(C, ts, dtype) <= budget:
            best = ts
        ts += 128
    if best:
        return best
    # TODO(synk): ragged S (not a multiple of 128) — fall back to whole-S blocks.
    return S


# --------------------------------------------------------------------------
# Kernels
# --------------------------------------------------------------------------
def _fused_kernel(a_ref, at_ref, o_ref):
    """Whole-(C,S) blocks, bt batch elements per step: both matmuls + residual."""
    a = a_ref[...]                                     # (bt, C, S)  native dtype
    at = at_ref[...]                                   # (bt, S, C)  native dtype
    w = jnp.einsum('bcs,bsd->bcd', a, at,
                   preferred_element_type=jnp.float32)         # MXU, f32 accum
    wv = jnp.einsum('bcd,bds->bcs', w, a,
                    preferred_element_type=jnp.float32)        # W kept in f32
    o_ref[...] = (a + wv.astype(a.dtype)).astype(o_ref.dtype)


def _tiled_kernel(a_ref, at_ref, o_ref, w_ref):
    """grid=(B, 2, n_s): phase 0 accumulates W in VMEM, phase 1 applies it."""
    phase = pl.program_id(1)
    s = pl.program_id(2)

    @pl.when((phase == 0) & (s == 0))
    def _():
        w_ref[...] = jnp.zeros_like(w_ref)

    @pl.when(phase == 0)
    def _():
        w_ref[...] += jnp.dot(a_ref[...], at_ref[...],          # (C,tS)@(tS,C)
                              preferred_element_type=jnp.float32)

    @pl.when(phase == 1)
    def _():
        a = a_ref[...]                                          # (C, tS)
        wv = jnp.dot(w_ref[...], a,                             # f32 W @ a
                     preferred_element_type=jnp.float32)
        o_ref[...] = (a + wv.astype(a.dtype)).astype(o_ref.dtype)


# --------------------------------------------------------------------------
# Wrapper
# --------------------------------------------------------------------------
def channel_attention(x, *, s_tile=None, compute_dtype=None):
    """x: (B, C, H, W) -> (B, C, H, W), matching PyTorch Channel_Attention."""
    B, C, H, W = x.shape
    S = H * W

    a = x.reshape(B, C, S)                       # reshape_x
    if compute_dtype is not None and compute_dtype != x.dtype:
        a = a.astype(compute_dtype)              # optional bf16 streaming path
    at = a.reshape(B, S, C)                      # transpose_x: row-major reshape (free view)
    dtype = a.dtype

    cap = _vmem_capacity_bytes()
    vmem_limit = min(int(cap * 0.75), cap - 8 * 1024 * 1024)
    budget = vmem_limit // 2

    if s_tile is None:
        bt = _pick_batch_tile(B, C, S, dtype, budget)
        if bt > 0:
            out_flat = pl.pallas_call(
                _fused_kernel,
                out_shape=jax.ShapeDtypeStruct((B, C, S), x.dtype),
                grid=(B // bt,),
                in_specs=[
                    pl.BlockSpec((bt, C, S), lambda b: (b, 0, 0)),
                    pl.BlockSpec((bt, S, C), lambda b: (b, 0, 0)),
                ],
                out_specs=pl.BlockSpec((bt, C, S), lambda b: (b, 0, 0)),
                compiler_params=pltpu.CompilerParams(
                    dimension_semantics=("parallel",),
                    vmem_limit_bytes=vmem_limit),
            )(a, at)
            return out_flat.reshape(B, C, H, W)
        s_tile = _pick_s_tile(S, C, dtype, budget)

    assert S % s_tile == 0, "s_tile must divide H*W"
    n_s = S // s_tile

    out_flat = pl.pallas_call(
        _tiled_kernel,
        out_shape=jax.ShapeDtypeStruct((B, C, S), x.dtype),
        grid=(B, 2, n_s),
        in_specs=[
            pl.BlockSpec((None, C, s_tile), lambda b, p, s: (b, 0, s)),
            # Phase 0 streams the (S,C) view; phase 1's index map repeats the
            # last phase-0 block so no redundant DMA is issued for it.
            pl.BlockSpec((None, s_tile, C),
                         lambda b, p, s: (b, (1 - p) * s + p * (n_s - 1), 0)),
        ],
        out_specs=pl.BlockSpec((None, C, s_tile), lambda b, p, s: (b, 0, p * s)),
        scratch_shapes=[pltpu.VMEM((C, C), jnp.float32)],
        compiler_params=pltpu.CompilerParams(
            dimension_semantics=("parallel", "arbitrary", "arbitrary"),
            vmem_limit_bytes=vmem_limit),
    )(a, at)
    return out_flat.reshape(B, C, H, W)


# --------------------------------------------------------------------------
# Reference (numpy float64, independent of XLA matmul precision) + check
# --------------------------------------------------------------------------
def _reference(x):
    xd = np.asarray(x, dtype=np.float64)
    B, C, H, W = xd.shape
    a = xd.reshape(B, C, -1)
    at = a.reshape(B, -1, C)
    w = np.einsum('bcs,bsd->bcd', a, at)
    wv = np.einsum('bcd,bds->bcs', w, a)
    return (a + wv).reshape(xd.shape)


def _check(y, y_ref, tag, tol=2e-2):
    y64 = np.asarray(y, dtype=np.float64)
    err = float(np.max(np.abs(y64 - y_ref)) / (np.max(np.abs(y_ref)) + 1e-12))
    assert err < tol, f"{tag}: relative error {err:.3e} exceeds {tol}"


if __name__ == "__main__":
    # Channel_Attention has no learnable parameters (empty __init__).
    key = jax.random.PRNGKey(0)
    k1, k2 = jax.random.split(key)

    # 1) Small config -> fused path (batch-tiled, >= 2 parallel grid steps).
    B, C, H, W = 2, 4, 16, 16
    x = jax.random.normal(k1, (B, C, H, W), dtype=jnp.float32)
    y = jax.block_until_ready(channel_attention(x))
    assert y.shape == (B, C, H, W)
    _check(y, _reference(x), "fused path")

    # 2) Forced through the single-call tiled (phase 0 + phase 1) path.
    B2, C2, H2, W2 = 2, 8, 32, 32            # S = 1024, s_tile = 256
    x2 = jax.random.normal(k2, (B2, C2, H2, W2), dtype=jnp.float32)
    y2 = jax.block_until_ready(channel_attention(x2, s_tile=256))
    _check(y2, _reference(x2), "tiled path")

    print("KERNEL_OK")
</pallas_src>

<mosaic_0001>
module attributes {stable_mosaic.version = 11 : i64} {
  func.func @_fused_kernel(%arg0: i32, %arg1: memref<1x4x256xf32, #tpu.memory_space<vmem>>, %arg2: memref<1x256x4xf32, #tpu.memory_space<vmem>>, %arg3: memref<1x4x256xf32, #tpu.memory_space<vmem>>) attributes {dimension_semantics = [#tpu.dimension_semantics<parallel>], iteration_bounds = array<i64: 2>, scalar_prefetch = 0 : i64, scratch_operands = 0 : i64, tpu.core_type = #tpu.core_type<tc>, window_params = [{transform_indices = @transform_0, window_bounds = array<i64: 1, 4, 256>}, {transform_indices = @transform_1, window_bounds = array<i64: 1, 256, 4>}, {transform_indices = @transform_2, window_bounds = array<i64: 1, 4, 256>}]} {
    %c0 = arith.constant 0 : index
    %c0_0 = arith.constant 0 : index
    %c0_1 = arith.constant 0 : index
    %0 = vector.load %arg1[%c0, %c0_0, %c0_1] : memref<1x4x256xf32, #tpu.memory_space<vmem>>, vector<1x4x256xf32>
    %c0_2 = arith.constant 0 : index
    %c0_3 = arith.constant 0 : index
    %c0_4 = arith.constant 0 : index
    %1 = vector.load %arg2[%c0_2, %c0_3, %c0_4] : memref<1x256x4xf32, #tpu.memory_space<vmem>>, vector<1x256x4xf32>
    "tpu.trace_start"() <{level = 10 : i32, message = "bcs,bsd->bcd"}> : () -> ()
    %cst = arith.constant dense<0.000000e+00> : vector<1x4x4xf32>
    %2 = tpu.matmul %0, %1, %cst {dimension_numbers = #tpu.dot_dimension_numbers<[2], [1], [1], [2], [0, 0, 0, 1, 1, 2], [0], [0]>} : vector<1x4x256xf32>, vector<1x256x4xf32>, vector<1x4x4xf32> -> vector<1x4x4xf32>
    "tpu.trace_stop"() : () -> ()
    "tpu.trace_start"() <{level = 10 : i32, message = "bcd,bds->bcs"}> : () -> ()
    %cst_5 = arith.constant dense<0.000000e+00> : vector<1x4x256xf32>
    %3 = tpu.matmul %2, %0, %cst_5 {dimension_numbers = #tpu.dot_dimension_numbers<[2], [1], [1], [2], [0, 0, 0, 1, 1, 2], [0], [0]>} : vector<1x4x4xf32>, vector<1x4x256xf32>, vector<1x4x256xf32> -> vector<1x4x256xf32>
    "tpu.trace_stop"() : () -> ()
    %4 = arith.addf %0, %3 : vector<1x4x256xf32>
    %c0_6 = arith.constant 0 : index
    %c0_7 = arith.constant 0 : index
    %c0_8 = arith.constant 0 : index
    %5 = vector.load %arg3[%c0_6, %c0_7, %c0_8] : memref<1x4x256xf32, #tpu.memory_space<vmem>>, vector<1x4x256xf32>
    tpu.vector_store %arg3[%c0_6, %c0_7, %c0_8], %4 {strides = array<i32>} : memref<1x4x256xf32, #tpu.memory_space<vmem>>, vector<1x4x256xf32>,
    return
  }
  func.func @transform_0(%arg0: i32) -> (i32, i32, i32) {
    %c0_i32 = arith.constant 0 : i32
    %c0_i32_0 = arith.constant 0 : i32
    %c0_i32_1 = arith.constant 0 : i32
    return %arg0, %c0_i32, %c0_i32_0 : i32, i32, i32
  }
  func.func @transform_1(%arg0: i32) -> (i32, i32, i32) {
    %c0_i32 = arith.constant 0 : i32
    %c0_i32_0 = arith.constant 0 : i32
    %c0_i32_1 = arith.constant 0 : i32
    return %arg0, %c0_i32, %c0_i32_0 : i32, i32, i32
  }
  func.func @transform_2(%arg0: i32) -> (i32, i32, i32) {
    %c0_i32 = arith.constant 0 : i32
    %c0_i32_0 = arith.constant 0 : i32
    %c0_i32_1 = arith.constant 0 : i32
    return %arg0, %c0_i32, %c0_i32_0 : i32, i32, i32
  }
}

</mosaic_0001>

<bundles_post_ra>
// kernel: tpu_custom_call.1
= control target key start
LH: loop header
LB: loop body
LE: loop exit
PB: predicated region body
PF: predicated region fallthrough
CT: control target
= control target key end

     0   :  { %7 = vsyncpa [#allocation3], 0  ;;  %s786_s0 = inlined_call_operand.vmem [shape: f32[2,4,256], index: 0, kind: input, shape index: {}]   ;;  %s787_s1 = inlined_call_operand.vmem [shape: f32[2,256,4], index: 1, kind: input, shape index: {}]   ;;  %s788_s2 = inlined_call_operand.hbm [shape: f32[2,4,256], index: 2, kind: output, shape index: {}]  }
   0x1   :  { %9 = vsyncpa [#allocation3 + $0x1], 0  ;;  %s649_s9 = smov 0   ;;  %s651_s10 = smov 0  }
   0x2   :  { %s653_s11 = smov 0   ;;  %s655_s12 = smov 0  }
   0x3 LB: > { %s670_s13 = sadd.s32 4294967295, %s630_s12   ;;  %s440_s14 = sadd.s32 4294967294, %s630_s12   ;;  %s630_s12 = sphi %s655_s12, %s794_s12   ;;  %s626_s11 = sphi %s653_s11, %s793_s11   ;;  %s622_s10 = sphi %s651_s10, %s792_s10   ;;  %s618_s9 = sphi %s649_s9, %s791_s9  }
   0x4   : > { %s674_s15 = sadd.s32 1, %s630_s12   ;;  %s74_s16 = sadd.s32 1, %s626_s11 }
   0x5   : > { %s71_s17 = ssub.s32 %s630_s12, %s674_s15  ;;  %p84_p0 = scmp.ne.s32.totalorder %s626_s11, %s622_s10 }
   0x6   : > { %p72_p1 = scmp.eq.s32.totalorder %s71_s17, 0  ;;  %p85_p2 = scmp.eq.s32.totalorder %s670_s13, 1 }
   0x7   : > { %p90_p3 = scmp.ne.s32.totalorder %s622_s10, %s618_s9  ;;  %p91_p4 = scmp.eq.s32.totalorder %s440_s14, 1 }
   0x8   : > { %s685_s18 = scalar_select %p72_p1, %s626_s11, %s74_s16  }
   0x9   : > { %p687_p5 = por %p85_p2, %p84_p0  ;;  %p691_p6 = por %p91_p4, %p90_p3 }
   0xa   : > { %p443_p7 = scmp.ge.s32.totalorder %s630_s12, 1  ;;  %p125_p8 = scmp.lt.s32.totalorder %s630_s12, 3 }
   0xc   : > { %p126_p9 = pnand %p443_p7, %p125_p8 }
   0xd   : > { %p152_p10 = scmp.lt.s32.totalorder (!%p126_p9), %s670_s13, 1  ;;  %vm272_vm0 = vcmask (!%p126_p9), 1043456   ;;  %v632_v50 = vmov (!%p126_p9), 0.0   ;;  %vm268_vm1 = vcmask (!%p126_p9), 31744   ;;  %s149_s30 = sand.u32 (!%p126_p9), 1, %s622_s10  }
   0xe   : > { %129 = sbr.rel (%p126_p9) target bundleno = 506 (0x1fa), region = 28  ;;  %341 = vmatprep.mubr.f32.mxu1 (!%p126_p9), %v632_v50  ;;  %s444_s3 = sshll.u32 (!%p126_p9), %s149_s30, 3 }
   0xf   : > { %s459_s4 = sshll.u32 (!%p126_p9), %s670_s13, 7  ;;  %s151_s5 = scalar_lea.vmem (!%p126_p9), [#allocation2], %s444_s3 }
  0x10   : > { %s369_s6 = sshll.u32 (!%p126_p9), %s151_s5, 4  ;;  %s744_s14 = scalar_lea.hbm (!%p126_p9), %s788_s2, %s459_s4  ;;  %s746_s6 = int_to_ptr.vmem [resolvable:$true] %s369_s6 }
  0x11   : > { %s355_s16 = scalar_lea.sflag (!%p126_p9), [#allocation3], %s149_s30  ;;  %s568_s17 = scalar_lea.vmem (!%p126_p9), %s746_s6, 128 }
  0x12   : > { %p569_p11 = scmp.ne.s32.totalorder (!%p126_p9), %s746_s6, %s568_s17 }
  0x14   : > { %p570_p12 = pnand (!%p126_p9), %p569_p11, %p687_p5 }
  0x15   : > { %s153_s21 = scalar_select %p152_p10, %s670_s13, 1 }
  0x16   : > { %p571_p13 = pneg %p570_p12  ;;  %s633_s13 = smov [#allocation2]  }
  0x17   : > { %s458_s22 = sshll.u32 %s153_s21, 8  ;;  %s457_s26 = sshll.u32 %s153_s21, 3 }
  0x18   : > { %s702_s25 = scalar_lea.vmem %s787_s1, %s458_s22  ;;  %s156_s29 = scalar_lea.vmem %s786_s0, %s457_s26 }
  0x19   : > { %v179_v0 = vld [vmem:[%s702_s25 + $0x80] sm:$0xff]  ;;  %v180_v1 = vld [vmem:[%s702_s25 + $0x88] sm:$0xff]  ;;  %v181_v5 = vld [vmem:[%s702_s25 + $0x90] sm:$0xff]  ;;  %s572_s21 = sshll.u32 %s633_s13, 4  ;;  %s573_s21 = int_to_ptr.vmem [resolvable:$false] %s572_s21 }
  0x1a   : > { %v163_v2 = vld [vmem:[%s702_s25] sm:$0xff]  ;;  %v495_v3 = vpack.c.bf16 %v180_v1, %v179_v0  ;;  %v164_v4 = vld [vmem:[%s702_s25 + $0x8] sm:$0xff]  ;;  %v182_v6 = vld [vmem:[%s702_s25 + $0x98] sm:$0xff]  ;;  %s574_s22 = scalar_lea.vmem %s573_s21, 256  ;;  %p575_p0 = scmp.lt.s32.totalorder %s746_s6, %s573_s21 }
  0x1b   : > { %v497_v7 = vpack.c.bf16 %v164_v4, %v163_v2  ;;  %v499_v8 = vpack.c.bf16 %v182_v6, %v181_v5  ;;  %v165_v9 = vld [vmem:[%s702_s25 + $0x10] sm:$0xff]  ;;  %v166_v10 = vld [vmem:[%s702_s25 + $0x18] sm:$0xff]  ;;  %v183_v11 = vld [vmem:[%s702_s25 + $0xa0] sm:$0xff]  ;;  %p576_p1 = scmp.lt.s32.totalorder %s574_s22, %s568_s17 }
  0x1c   : > { %496 = vmatprep.subr.bf16.mxu0 %v495_v3  ;;  %v184_v12 = vld [vmem:[%s702_s25 + $0xa8] sm:$0xff]  ;;  %v501_v13 = vpack.c.bf16 %v166_v10, %v165_v9  ;;  %v167_v15 = vld [vmem:[%s702_s25 + $0x20] sm:$0xff]  ;;  %v185_v17 = vld [vmem:[%s702_s25 + $0xb0] sm:$0xff] }
  0x1d   : > { %498 = vmatpush3.bf16.msra.mxu0 %v497_v7  ;;  %v503_v14 = vpack.c.bf16 %v184_v12, %v183_v11  ;;  %v168_v16 = vld [vmem:[%s702_s25 + $0x28] sm:$0xff]  ;;  %v186_v18 = vld [vmem:[%s702_s25 + $0xb8] sm:$0xff]  ;;  %v169_v21 = vld [vmem:[%s702_s25 + $0x30] sm:$0xff]  ;;  %p577_p2 = por %p576_p1, %p575_p0 }
  0x1e   : > { %500 = vmatprep.subr.bf16.mxu0 %v499_v8  ;;  %v505_v19 = vpack.c.bf16 %v168_v16, %v167_v15  ;;  %v507_v20 = vpack.c.bf16 %v186_v18, %v185_v17  ;;  %v170_v22 = vld [vmem:[%s702_s25 + $0x38] sm:$0xff]  ;;  %v187_v23 = vld [vmem:[%s702_s25 + $0xc0] sm:$0xff]  ;;  %v188_v24 = vld [vmem:[%s702_s25 + $0xc8] sm:$0xff] }
  0x1f   : > { %v162_v25 = vld [vmem:[%s156_s29] sm:$0xff]  ;;  %v509_v27 = vpack.c.bf16 %v170_v22, %v169_v21  ;;  %v511_v28 = vpack.c.bf16 %v188_v24, %v187_v23  ;;  %v172_v30 = vld [vmem:[%s702_s25 + $0x48] sm:$0xff]  ;;  %v189_v31 = vld [vmem:[%s702_s25 + $0xd0] sm:$0xff]  ;;  %p578_p3 = pnand %p577_p2, %p571_p13 }
  0x20   : > { %v196_v26 = vcombine.high %v162_v25, %v162_v25  ;;  %v171_v29 = vld [vmem:[%s702_s25 + $0x40] sm:$0xff]  ;;  %v190_v32 = vld [vmem:[%s702_s25 + $0xd8] sm:$0xff]  ;;  %v173_v35 = vld [vmem:[%s702_s25 + $0x50] sm:$0xff] }
  0x21   : > { %502 = vmatpush3.bf16.msra.mxu0 %v501_v13  ;;  %v513_v33 = vpack.c.bf16 %v172_v30, %v171_v29  ;;  %v515_v34 = vpack.c.bf16 %v190_v32, %v189_v31  ;;  %v174_v36 = vld [vmem:[%s702_s25 + $0x58] sm:$0xff]  ;;  %v191_v37 = vld [vmem:[%s702_s25 + $0xe0] sm:$0xff]  ;;  %v192_v38 = vld [vmem:[%s702_s25 + $0xe8] sm:$0xff] }
  0x22   : > { %504 = vmatprep.subr.bf16.mxu0 %v503_v14  ;;  %262 = vmatprep.mubr.f32.mxu0 %v196_v26  ;;  %v517_v39 = vpack.c.bf16 %v174_v36, %v173_v35  ;;  %v519_v40 = vpack.c.bf16 %v192_v38, %v191_v37  ;;  %v175_v41 = vld [vmem:[%s702_s25 + $0x60] sm:$0xff]  ;;  %v176_v42 = vld [vmem:[%s702_s25 + $0x68] sm:$0xff]  ;;  %v193_v43 = vld [vmem:[%s702_s25 + $0xf0] sm:$0xff] }
  0x23   : > { %v194_v44 = vld [vmem:[%s702_s25 + $0xf8] sm:$0xff]  ;;  %v521_v45 = vpack.c.bf16 %v176_v42, %v175_v41  ;;  %v177_v47 = vld [vmem:[%s702_s25 + $0x70] sm:$0xff]  ;;  %449 = vmatprep.subr.msk.mxu1 %vm272_vm0, %v196_v26 }
  0x24   : > { %v523_v46 = vpack.c.bf16 %v194_v44, %v193_v43  ;;  %v178_v48 = vld [vmem:[%s702_s25 + $0x78] sm:$0xff]  ;;  %450 = vmatpush1.msk.msra.mxu1 %vm272_vm0, %v162_v25 }
  0x25   : > { %506 = vmatpush3.bf16.msra.mxu0 %v505_v19  ;;  %v525_v49 = vpack.c.bf16 %v178_v48, %v177_v47 }
  0x26   : > { %508 = vmatprep.subr.bf16.mxu0 %v507_v20 }
  0x29   : > { %510 = vmatpush3.bf16.msra.mxu0 %v509_v27 }
  0x2a   : > { %512 = vmatprep.subr.bf16.mxu0 %v511_v28 }
  0x2d   : > { %514 = vmatpush3.bf16.msra.mxu0 %v513_v33 }
  0x2e   : > { %516 = vmatprep.subr.bf16.mxu0 %v515_v34 }
  0x31   : > { %518 = vmatpush3.bf16.msra.mxu0 %v517_v39 }
  0x32   : > { %520 = vmatprep.subr.bf16.mxu0 %v519_v40 }
  0x35   : > { %522 = vmatpush3.bf16.msra.mxu0 %v521_v45 }
  0x36   : > { %524 = vmatprep.subr.bf16.mxu0 %v523_v46 }
  0x39   : > { %526 = vmatpush3.bf16.msra.mxu0 %v525_v49 }
  0x3c   : > { %263 = vmatmul.mubr.f32.vlgmr.msra.gmra.mrb[0].mxu0 %v162_v25 }
 0x10f   : > { %v492_v51 = vpop.f32.mrb[0].mxu0 }
 0x110   : > { %v493_v52 = vpop.f32.mrb[1].mxu0 }
 0x111   : > { %v494_v53 = vadd.f32 %v493_v52, %v492_v51 }
 0x113   : > { %451 = vmatmul.mubr.msk.f32.vlgmr.msra.gmra.mrb[0].mxu1 %vm268_vm1, %v494_v53 }
 0x1e6   : > { %v343_v54 = vpop.f32.mrb[0].mxu1 }
 0x1e7   : > { %v345_v55 = vpop.f32.mrb[1].mxu1 }
 0x1e8   : > { %v350_v56 = vcombine.low %v343_v54, %v345_v55 }
 0x1ea   : > { %v352_v57 = vadd.f32 %v350_v56, %v162_v25 }
 0x1ec   : > { %353 = vst [vmem:[%s151_s5] sm:$0xff] %v352_v57 }
 0x1ed   : > { %581 = shalt.err (!%p578_p3)
}
 0x1ee   : > { %s582_s23 = scalar_lea.hbm %s744_s14, 128  ;;  %s586_s26 = scalar_lea.hbm %s788_s2, 256 }
 0x1ef   : > { %p583_p4 = scmp.ne.s32.totalorder %s744_s14, %s582_s23  ;;  %p587_p9 = scmp.lt.u32.totalorder %s744_s14, %s788_s2 }
 0x1f0   : > { %p588_p10 = scmp.lt.u32.totalorder %s586_s26, %s582_s23  ;;  %p590_p12 = scmp.lt.u32.totalorder %s582_s23, %s744_s14 }
 0x1f1   : > { %p584_p7 = pnand %p583_p4, %p687_p5 }
 0x1f2   : > { %p589_p11 = por %p588_p10, %p587_p9 }
 0x1f3   : > { %p585_p8 = pneg %p584_p7 }
 0x1f4   : > { %p591_p13 = por %p590_p12, %p589_p11 }
 0x1f6   : > { %p592_p0 = pnand %p591_p13, %p585_p8 }
 0x1f8   : > { %595 = shalt.err (!%p592_p0)
}
 0x1f9   : > { %527 = dma.vmem_to_hbm [thread:$0]  (%p687_p5), %s746_s6, 128, %s744_s14, %s355_s16  }
 0x1fa PF: > { %p533_p1 = scmp.ge.s32.totalorder %s630_s12, 2  ;;  %s381_s29 = sand.u32 1, %s618_s9  }
 0x1fb   : > { %s382_s30 = scalar_lea.sflag [#allocation3], %s381_s29 }
 0x1fc   : > { %p530_p2 = pnand %p533_p1, %p691_p6 }
 0x1fe   : > { %613 = dma.done.wait (!%p530_p2), %s382_s30, 128  }
 0x1ff   : > { %615 = vsyncadd (!%p530_p2), %s382_s30, 4294967168  ;;  %p12_p3 = scmp.ge.s32.totalorder %s674_s15, 4   ;;  %s791_s9 = smov %s622_s10 }
 0x200   : > { %s792_s10 = smov %s626_s11  ;;  %s793_s11 = smov %s685_s18 }
 0x201   : > { %s794_s12 = smov %s674_s15  ;;  %14 = sbr.rel (!%p12_p3) target bundleno = 3 (0x3), region = 66 }
 0x208   :  { %387 = vsyncpa [#allocation3], 1 }
 0x209   :  { %389 = vsyncpa [#allocation3 + $0x1], 1 }

</bundles_post_ra>
